<compile_context>
chip_gen: v7x
topology: tpu7x:2x2x1
jax: 0.10.0
libtpu: 0.0.40
codegen_flags: <defaults>
</compile_context>

<pallas_src>
import jax
import jax.numpy as jnp
from jax.experimental import pallas as pl
from jax.experimental.pallas import tpu as pltpu


def _round_up(x, m):
    return ((x + m - 1) // m) * m


def _hw_params():
    """Best-effort per-generation budgets (conservative defaults if unknown)."""
    vmem_capacity = 64 << 20            # assume smallest (v7x per-TC) if unknown
    try:
        info = pltpu.get_tpu_info()
        vmem_capacity = int(getattr(info, "vmem_capacity_bytes", vmem_capacity))
    except Exception:
        pass
    # Headroom for Mosaic internal scratch / spills; cap per review guidance
    # (~48-56 MiB usable on v7x per TC, ~96-100 MiB on v6e/v5e).
    vmem_limit = min(int(vmem_capacity * 0.75), 100 << 20)

    # MXU-flops / HBM-bytes ratio per TensorCore -> batch-size cutover for the
    # one-hot MXU gather.  Conservative (v5e-ish) default if chip is unknown.
    ratio = 240.0
    kind = ""
    try:
        kind = jax.devices()[0].device_kind.lower()
    except Exception:
        pass
    if "v6" in kind:
        ratio = 680.0
    elif "v7" in kind or "tpu7" in kind:
        ratio = 620.0
    elif "v5p" in kind:
        ratio = 450.0
    elif "v5" in kind:
        ratio = 240.0
    elif "v2" in kind or "v3" in kind:
        vmem_limit = min(vmem_limit, 12 << 20)
    return vmem_limit, ratio


def _single_buffered(block_shape, index_map):
    """Resident (constant index_map) spec: single-buffered if supported."""
    try:
        return pl.BlockSpec(block_shape, index_map, pipeline_mode=pl.Buffered(1))
    except Exception:  # pragma: no cover - older jax without pipeline_mode
        return pl.BlockSpec(block_shape, index_map)


# ----------------------------------------------------------------------------
# Path 1: resident one-hot MXU gather (small / medium batch).
# ----------------------------------------------------------------------------
def _make_resident_kernel(ncomp, tm, n_res):
    def kernel(*refs):
        comp_refs = refs[:ncomp]               # resident bf16 components (n_res, D)
        idx_ref = refs[ncomp]                  # (tm, 1) int32
        lam_ref = refs[ncomp + 1]              # (tm, 1) f32
        out_ref = refs[ncomp + 2]              # (tm, D)

        row0 = pl.multiple_of(pl.program_id(0) * tm, 8)

        # Current rows, read straight out of the resident copy (no second
        # streamed read of xs).  hi+mid reproduces f32 inputs to ~2^-16
        # relative error; a single component is exact for bf16 inputs.
        # NOTE: non-finite inputs (Inf) would turn the residual into NaN.
        x = comp_refs[0][pl.ds(row0, tm), :].astype(jnp.float32)
        for c in comp_refs[1:]:
            x = x + c[pl.ds(row0, tm), :].astype(jnp.float32)

        # One-hot permutation gather on the (otherwise idle) MXU.  Each one-hot
        # row has a single 1, so per-component the matmul gather is exact.
        cols = jax.lax.broadcasted_iota(jnp.int32, (tm, n_res), 1)
        onehot = (cols == idx_ref[...]).astype(jnp.bfloat16)
        dn = (((1,), (0,)), ((), ()))
        g = jax.lax.dot_general(onehot, comp_refs[0][...], dn,
                                preferred_element_type=jnp.float32)
        for c in comp_refs[1:]:
            g = g + jax.lax.dot_general(onehot, c[...], dn,
                                        preferred_element_type=jnp.float32)

        # Mix: out = x + lam * (x_perm - x)   (one FMA per element on the VPU).
        lam = lam_ref[...].astype(jnp.float32)
        out_ref[...] = (x + lam * (g - x)).astype(out_ref.dtype)

    return kernel


# ----------------------------------------------------------------------------
# Path 2: in-kernel DMA gather (large batch / past the MXU cutover).
# ----------------------------------------------------------------------------
def _dma_gather_kernel(idx_sm, lam_ref, x_ref, xs_hbm, out_ref, gbuf, sem):
    """Cross-step double-buffered per-row DMA gather + blocked mix.

    idx_sm : SMEM (nb*tm,) int32 permutation (scalar prefetch)
    lam_ref: VMEM (tm, 1) f32
    x_ref  : VMEM (tm, D) current rows of xs (auto-pipelined)
    xs_hbm : ANY  (N, D)  whole xs, stays in HBM (gather source)
    out_ref: VMEM (tm, D)
    gbuf   : VMEM (2, tm, D) scratch (double-buffered gathered rows)
    sem    : DMA semaphores (2,)
    """
    b = pl.program_id(0)
    nb = pl.num_programs(0)
    tm = out_ref.shape[0]

    def start_block_gather(blk, slot):
        base = blk * tm

        def issue(r, carry):
            src = idx_sm[base + r]
            pltpu.make_async_copy(xs_hbm.at[src], gbuf.at[slot, r],
                                  sem.at[slot]).start()
            return carry

        jax.lax.fori_loop(0, tm, issue, 0)

    # Prime the pipeline with block 0 ...
    @pl.when(b == 0)
    def _():
        start_block_gather(0, 0)

    # ... and prefetch the next block's permuted rows while mixing this one.
    @pl.when(b + 1 < nb)
    def _():
        start_block_gather(b + 1, (b + 1) % 2)

    slot = b % 2

    def wait_row(r, carry):
        pltpu.make_async_copy(xs_hbm.at[0], gbuf.at[slot, r],
                              sem.at[slot]).wait()
        return carry

    jax.lax.fori_loop(0, tm, wait_row, 0)

    x = x_ref[...].astype(jnp.float32)
    xp = gbuf[slot].astype(jnp.float32)
    lam = lam_ref[...].astype(jnp.float32)
    out_ref[...] = (x + lam * (xp - x)).astype(out_ref.dtype)


# ----------------------------------------------------------------------------
# Wrapper / dispatch.
# ----------------------------------------------------------------------------
def aug_module_forward(xs, lam, y, index, *, block_rows=512,
                       force_dma_gather=False, vmem_limit_bytes=None,
                       mxu_hbm_ratio=None):
    """Pallas implementation of AugModule.forward. Returns (x_mix, y_a, y_b)."""
    N, D = xs.shape
    out_dtype = xs.dtype
    itemsize = jnp.dtype(xs.dtype).itemsize
    d_pad = _round_up(D, 128)

    auto_vmem, auto_ratio = _hw_params()
    vmem_limit = int(vmem_limit_bytes) if vmem_limit_bytes is not None else auto_vmem
    ratio = float(mxu_hbm_ratio) if mxu_hbm_ratio is not None else auto_ratio
    budget = int(vmem_limit * 0.9)

    lam_col = jnp.reshape(lam, (N, 1)).astype(jnp.float32)
    idx_vec = jnp.clip(jnp.reshape(index, (N,)).astype(jnp.int32), 0, N - 1)

    # ---- resident-path sizing (includes kernel-internal temporaries) -------
    ncomp = 1 if xs.dtype == jnp.bfloat16 else 2
    comp_bytes = 2  # bf16 components

    def resident_need(tm_):
        n_res_ = _round_up(N, tm_)
        resident = ncomp * n_res_ * d_pad * comp_bytes            # Buffered(1)
        resident_tmp = n_res_ * d_pad * comp_bytes                # matmul-operand slack
        out_blk = 2 * tm_ * d_pad * itemsize                      # out, double-buffered
        small_blk = 2 * 2 * tm_ * 128 * 4                         # idx + lam blocks
        temps = (4 * tm_ * d_pad * 4                              # x, g, f32 casts
                 + tm_ * _round_up(n_res_, 128) * 8)              # iota + one-hot
        return resident + resident_tmp + out_blk + small_blk + temps

    tm = min(_round_up(N, 8), _round_up(block_rows, 8))
    while tm > 8 and resident_need(tm) > budget:
        tm = _round_up(max(tm // 2, 8), 8)

    # Gather flops per output element ~ 2*ncomp*N vs ~ (2*ncomp + itemsize)
    # HBM bytes per element: past this N the MXU gather becomes the critical
    # unit, so switch to the DMA-gather path regardless of VMEM fit.
    hbm_bytes_per_elem = ncomp * comp_bytes + itemsize
    n_cutover = int(ratio * hbm_bytes_per_elem / (2.0 * ncomp))

    use_resident = (not force_dma_gather
                    and N <= n_cutover
                    and resident_need(tm) <= budget)

    if use_resident:
        nb = pl.cdiv(N, tm)
        n_res = nb * tm
        pad = n_res - N

        # bf16 components, computed ONCE in the wrapper (hoisted out of the
        # per-grid-step body) and zero-padded to a whole number of row blocks
        # so the in-kernel row slice / one-hot gather never touches undefined
        # VMEM (and 0-rows cannot poison the MXU accumulation).
        if ncomp == 1:
            comp0 = xs if pad == 0 else jnp.pad(xs, ((0, pad), (0, 0)))
            comps = [comp0.astype(jnp.bfloat16)]
        else:
            x32 = xs.astype(jnp.float32)
            if pad:
                x32 = jnp.pad(x32, ((0, pad), (0, 0)))
            hi = x32.astype(jnp.bfloat16)
            mid = (x32 - hi.astype(jnp.float32)).astype(jnp.bfloat16)
            comps = [hi, mid]
        idx_p = jnp.pad(idx_vec, (0, pad)).reshape(n_res, 1)
        lam_p = jnp.pad(lam_col, ((0, pad), (0, 0)))

        resident_spec = _single_buffered((n_res, D), lambda b: (0, 0))
        row_spec = pl.BlockSpec((tm, D), lambda b: (b, 0))
        col_spec = pl.BlockSpec((tm, 1), lambda b: (b, 0))

        x_mix = pl.pallas_call(
            _make_resident_kernel(ncomp, tm, n_res),
            out_shape=jax.ShapeDtypeStruct((N, D), out_dtype),
            grid=(nb,),
            in_specs=[resident_spec] * ncomp + [col_spec, col_spec],
            out_specs=row_spec,
            compiler_params=pltpu.CompilerParams(
                dimension_semantics=("parallel",),
                vmem_limit_bytes=vmem_limit),
        )(*comps, idx_p, lam_p)
    else:
        # DMA-gather path: permuted rows fetched HBM->VMEM inside the kernel
        # (no XLA gather materializing x_perm in HBM).
        def fallback_need(tm_):
            return (3 * 2 * tm_ * d_pad * itemsize   # x blocks, out blocks, gbuf
                    + 2 * tm_ * 128 * 4              # lam blocks
                    + 3 * tm_ * d_pad * 4)           # f32 temps in the mix

        tm_fb = min(_round_up(N, 8), _round_up(block_rows, 8))
        while tm_fb > 8 and fallback_need(tm_fb) > budget:
            tm_fb = _round_up(max(tm_fb // 2, 8), 8)

        nb = pl.cdiv(N, tm_fb)
        n_fb = nb * tm_fb
        idx_p = jnp.pad(idx_vec, (0, n_fb - N))      # SMEM row table (padded)

        row_spec = pl.BlockSpec((tm_fb, D), lambda b, idx: (b, 0))
        col_spec = pl.BlockSpec((tm_fb, 1), lambda b, idx: (b, 0))

        # TODO(synk): on v7x the "arbitrary" (sequential) axis forgoes the 2nd
        # TensorCore for this path; a core_map split of the row blocks would
        # recover it while keeping the cross-step DMA prefetch per core.
        x_mix = pl.pallas_call(
            _dma_gather_kernel,
            out_shape=jax.ShapeDtypeStruct((N, D), out_dtype),
            grid_spec=pltpu.PrefetchScalarGridSpec(
                num_scalar_prefetch=1,
                grid=(nb,),
                in_specs=[col_spec,                              # lam
                          row_spec,                              # x rows (streamed)
                          pl.BlockSpec(memory_space=pl.ANY)],    # xs in HBM
                out_specs=row_spec,
                scratch_shapes=[pltpu.VMEM((2, tm_fb, D), xs.dtype),
                                pltpu.SemaphoreType.DMA((2,))]),
            compiler_params=pltpu.CompilerParams(
                dimension_semantics=("arbitrary",),
                vmem_limit_bytes=vmem_limit),
        )(idx_p, lam_col, xs, xs)

    # TODO(synk): y / y[index] label bookkeeping is a trivial int gather kept
    # in plain JAX glue.
    y_a = y
    y_b = jnp.take(y, jnp.reshape(index, (N,)), axis=0)
    return x_mix, y_a, y_b


if __name__ == "__main__":
    key = jax.random.PRNGKey(0)

    def reference(xs, lam, y, index):
        lam_b = lam.astype(jnp.float32)[:, None]
        x32 = xs.astype(jnp.float32)
        x_mix = (1.0 - lam_b) * x32 + lam_b * x32[index, :]
        return x_mix.astype(xs.dtype), y, y[index]

    def run_case(case_key, N, D, dtype=jnp.float32, atol=2e-4, **kwargs):
        k1, k2, k3, k4 = jax.random.split(case_key, 4)
        xs = jax.random.normal(k1, (N, D), dtype=jnp.float32).astype(dtype)
        lam = jax.random.uniform(k2, (N,), dtype=jnp.float32)
        y = jax.random.randint(k3, (N,), 0, 10, dtype=jnp.int32)
        index = jax.random.permutation(k4, N).astype(jnp.int32)

        out = aug_module_forward(xs, lam, y, index, **kwargs)
        jax.block_until_ready(out)
        x_mix, y_a, y_b = out

        ref_x, ref_ya, ref_yb = reference(xs, lam, y, index)
        assert x_mix.shape == ref_x.shape and x_mix.dtype == ref_x.dtype
        assert jnp.allclose(x_mix.astype(jnp.float32), ref_x.astype(jnp.float32),
                            atol=atol, rtol=1e-5), (N, D, dtype, kwargs)
        assert jnp.array_equal(y_a, ref_ya)
        assert jnp.array_equal(y_b, ref_yb)

    keys = jax.random.split(key, 5)
    # Resident one-hot-gather path, single row block.  (f32 goes through the
    # hi+mid bf16 split: ~2^-16 relative error -> atol 2e-4 on O(1) data.)
    run_case(keys[0], N=8, D=256)
    # Resident path, several row blocks + padded tail (N not a multiple of tm).
    run_case(keys[1], N=20, D=384, block_rows=8)
    # bf16 inputs: single-component (bit-exact) resident gather.
    run_case(keys[2], N=16, D=256, dtype=jnp.bfloat16, atol=5e-2)
    # Forced DMA-gather path, multiple row blocks + padded index tail
    # (exercises the cross-step double-buffered per-row DMA prefetch).
    run_case(keys[3], N=40, D=256, block_rows=16, force_dma_gather=True)
    # Forced DMA-gather path, single block (prologue-only).
    run_case(keys[4], N=8, D=256, force_dma_gather=True)

    print("KERNEL_OK")
</pallas_src>

<mosaic_0001>
module attributes {stable_mosaic.version = 11 : i64} {
  func.func @kernel(%arg0: i32, %arg1: memref<8x256xbf16, #tpu.memory_space<vmem>>, %arg2: memref<8x256xbf16, #tpu.memory_space<vmem>>, %arg3: memref<8x1xi32, #tpu.memory_space<vmem>>, %arg4: memref<8x1xf32, #tpu.memory_space<vmem>>, %arg5: memref<8x256xf32, #tpu.memory_space<vmem>>) attributes {dimension_semantics = [#tpu.dimension_semantics<parallel>], iteration_bounds = array<i64: 1>, scalar_prefetch = 0 : i64, scratch_operands = 0 : i64, tpu.core_type = #tpu.core_type<tc>, window_params = [{pipeline_mode = #tpu.pipeline_mode<synchronous>, transform_indices = @transform_0, window_bounds = array<i64: 8, 256>}, {pipeline_mode = #tpu.pipeline_mode<synchronous>, transform_indices = @transform_1, window_bounds = array<i64: 8, 256>}, {transform_indices = @transform_2, window_bounds = array<i64: 8, 1>}, {transform_indices = @transform_3, window_bounds = array<i64: 8, 1>}, {transform_indices = @transform_4, window_bounds = array<i64: 8, 256>}]} {
    %c8_i32 = arith.constant 8 : i32
    %0 = arith.muli %arg0, %c8_i32 : i32
    %1 = tpu.assume_multiple %0, 8 : i32
    %2 = arith.index_cast %1 : i32 to index
    %c0 = arith.constant 0 : index
    %3 = vector.load %arg1[%2, %c0] : memref<8x256xbf16, #tpu.memory_space<vmem>>, vector<8x256xbf16>
    %4 = arith.extf %3 : vector<8x256xbf16> to vector<8x256xf32>
    %5 = arith.index_cast %1 : i32 to index
    %c0_0 = arith.constant 0 : index
    %6 = vector.load %arg2[%5, %c0_0] : memref<8x256xbf16, #tpu.memory_space<vmem>>, vector<8x256xbf16>
    %7 = arith.extf %6 : vector<8x256xbf16> to vector<8x256xf32>
    %8 = arith.addf %4, %7 : vector<8x256xf32>
    %9 = tpu.iota {dimensions = array<i32: 1>} : vector<8x8xi32>
    %c0_1 = arith.constant 0 : index
    %c0_2 = arith.constant 0 : index
    %10 = vector.load %arg3[%c0_1, %c0_2] : memref<8x1xi32, #tpu.memory_space<vmem>>, vector<8x1xi32>
    %11 = vector.broadcast %10 : vector<8x1xi32> to vector<8x8xi32>
    %12 = arith.cmpi eq, %9, %11 : vector<8x8xi32>
    %13 = arith.extui %12 : vector<8x8xi1> to vector<8x8xi32>
    %14 = arith.sitofp %13 : vector<8x8xi32> to vector<8x8xf32>
    %15 = arith.truncf %14 : vector<8x8xf32> to vector<8x8xbf16>
    %c0_3 = arith.constant 0 : index
    %c0_4 = arith.constant 0 : index
    %16 = vector.load %arg1[%c0_3, %c0_4] : memref<8x256xbf16, #tpu.memory_space<vmem>>, vector<8x256xbf16>
    %cst = arith.constant dense<0.000000e+00> : vector<8x256xf32>
    %17 = tpu.matmul %15, %16, %cst {dimension_numbers = #tpu.dot_dimension_numbers<[1], [0], [0], [1], [0, 0, 1, 1], [], []>} : vector<8x8xbf16>, vector<8x256xbf16>, vector<8x256xf32> -> vector<8x256xf32>
    %c0_5 = arith.constant 0 : index
    %c0_6 = arith.constant 0 : index
    %18 = vector.load %arg2[%c0_5, %c0_6] : memref<8x256xbf16, #tpu.memory_space<vmem>>, vector<8x256xbf16>
    %cst_7 = arith.constant dense<0.000000e+00> : vector<8x256xf32>
    %19 = tpu.matmul %15, %18, %cst_7 {dimension_numbers = #tpu.dot_dimension_numbers<[1], [0], [0], [1], [0, 0, 1, 1], [], []>} : vector<8x8xbf16>, vector<8x256xbf16>, vector<8x256xf32> -> vector<8x256xf32>
    %20 = arith.addf %17, %19 : vector<8x256xf32>
    %c0_8 = arith.constant 0 : index
    %c0_9 = arith.constant 0 : index
    %21 = vector.load %arg4[%c0_8, %c0_9] : memref<8x1xf32, #tpu.memory_space<vmem>>, vector<8x1xf32>
    %22 = arith.subf %20, %8 : vector<8x256xf32>
    %23 = vector.broadcast %21 : vector<8x1xf32> to vector<8x256xf32>
    %24 = arith.mulf %23, %22 : vector<8x256xf32>
    %25 = arith.addf %8, %24 : vector<8x256xf32>
    %c0_10 = arith.constant 0 : index
    %c0_11 = arith.constant 0 : index
    %26 = vector.load %arg5[%c0_10, %c0_11] : memref<8x256xf32, #tpu.memory_space<vmem>>, vector<8x256xf32>
    tpu.vector_store %arg5[%c0_10, %c0_11], %25 {strides = array<i32>} : memref<8x256xf32, #tpu.memory_space<vmem>>, vector<8x256xf32>,
    return
  }
  func.func @transform_0(%arg0: i32) -> (i32, i32) {
    %c0_i32 = arith.constant 0 : i32
    %c0_i32_0 = arith.constant 0 : i32
    %c0_i32_1 = arith.constant 0 : i32
    return %c0_i32, %c0_i32_0 : i32, i32
  }
  func.func @transform_1(%arg0: i32) -> (i32, i32) {
    %c0_i32 = arith.constant 0 : i32
    %c0_i32_0 = arith.constant 0 : i32
    %c0_i32_1 = arith.constant 0 : i32
    return %c0_i32, %c0_i32_0 : i32, i32
  }
  func.func @transform_2(%arg0: i32) -> (i32, i32) {
    %c0_i32 = arith.constant 0 : i32
    %c0_i32_0 = arith.constant 0 : i32
    return %arg0, %c0_i32 : i32, i32
  }
  func.func @transform_3(%arg0: i32) -> (i32, i32) {
    %c0_i32 = arith.constant 0 : i32
    %c0_i32_0 = arith.constant 0 : i32
    return %arg0, %c0_i32 : i32, i32
  }
  func.func @transform_4(%arg0: i32) -> (i32, i32) {
    %c0_i32 = arith.constant 0 : i32
    %c0_i32_0 = arith.constant 0 : i32
    return %arg0, %c0_i32 : i32, i32
  }
}

</mosaic_0001>

<bundles_post_ra>
// kernel: tpu_custom_call.1
= control target key start
LH: loop header
LB: loop body
LE: loop exit
PB: predicated region body
PF: predicated region fallthrough
CT: control target
= control target key end

     0   :  { %v231_v2 = vmov 0   ;;  %vm56_vm0 = vcmask 1043456   ;;  %s283_s0 = inlined_call_operand.vmem [shape: bf16[8,256], index: 0, kind: input, shape index: {}]   ;;  %s284_s1 = inlined_call_operand.vmem [shape: bf16[8,256], index: 1, kind: input, shape index: {}]   ;;  %s285_s2 = inlined_call_operand.vmem [shape: s32[8,1], index: 2, kind: input, shape index: {}]   ;;  %s286_s3 = inlined_call_operand.vmem [shape: f32[8,1], index: 3, kind: input, shape index: {}]   ;;  %s287_s4 = inlined_call_operand.hbm [shape: f32[8,256], index: 4, kind: output, shape index: {}]  }
   0x1   :  { %v37_v0 = vld [vmem:[%s285_s2] sm:$0xff]  ;;  %202 = vset.pattern.permute.xlu0 %v231_v2  ;;  %95 = vmatprep.mubr.bf16.mxu1 %v231_v2 }
   0x2   :  { %v46_v1 = vld [vmem:[%s284_s1] sm:$0xff] }
   0x3   :  { %v190_v3 = vcombine.high %v46_v1, %v46_v1  ;;  %v45_v4 = vld [vmem:[%s283_s0] sm:$0xff]  ;;  %v189_v5 = vcombine.low %v46_v1, %v46_v1 }
   0x4   :  { %9 = vsyncpa [#allocation3], 0  ;;  %39 = vperm.xlu0 %202, %v37_v0   ;;  %v194_v6 = vcombine.high %v45_v4, %v45_v4  ;;  %v193_v7 = vcombine.low %v45_v4, %v45_v4  ;;  %147 = vmatprep.mubr.bf16.mxu0 %v231_v2  ;;  %v156_v8 = vld [vmem:[%s286_s3] sm:$0xff]  ;;  %v35_v11 = vlaneseq  ;;  %v232_v14 = vmov 0.0   ;;  %s233_s0 = smov [#allocation2]  }
   0x5   :  { %191 = vmatprep.subr.msk.bf16.mxu1 %vm56_vm0, %v190_v3  ;;  %v58_v9 = vsel %vm56_vm0, %v189_v5, 0  ;;  %vm52_vm2 = vcmask 64512   ;;  %v26_v17 = vunpack.c.l.bf16 %v45_v4  ;;  %v31_v18 = vunpack.c.l.bf16 %v46_v1  ;;  %s176_s1 = sshll.u32 %s233_s0, 4  ;;  %s177_s1 = int_to_ptr.vmem [resolvable:$true] %s176_s1 }
   0x6   :  { %195 = vmatprep.subr.msk.bf16.mxu0 %vm56_vm0, %v194_v6  ;;  %64 = vmatpush1.bf16.msra.mxu1 %v58_v9  ;;  %v110_v10 = vsel %vm56_vm0, %v193_v7, 0  ;;  %v36_v12 = vand.u32 127, %v35_v11  ;;  %v27_v19 = vunpack.c.h.bf16 %v45_v4  ;;  %v32_v20 = vunpack.c.h.bf16 %v46_v1  ;;  %s207_s3 = scalar_lea.vmem %s177_s1, 256  ;;  %p212_p1 = scmp.lt.s32.totalorder %s177_s1, %s177_s1 }
   0x7   :  { %116 = vmatpush1.bf16.msra.mxu0 %v110_v10  ;;  %v33_v21 = vadd.f32 %v31_v18, %v26_v17  ;;  %p208_p0 = scmp.ne.s32.totalorder %s177_s1, %s207_s3  ;;  %p213_p2 = scmp.lt.s32.totalorder %s207_s3, %s207_s3 }
   0x8   :  { %161 = vperm.xlu0 %202, %v156_v8   ;;  %v34_v24 = vadd.f32 %v32_v20, %v27_v19 }
   0x9   :  { %p214_p3 = por %p213_p2, %p212_p1 }
   0xb   :  { %p215_p4 = pnand %p214_p3, %p208_p0 }
  0x83   :  { %v40_v13 = vpop.permute.xlu0 %39 }
  0x84   :  { %vm41_vm1 = vcmp.eq.s32.totalorder %v36_v12, %v40_v13 }
  0x85   :  { %v188_v15 = vsel %vm41_vm1, 1.0, %v232_v14 }
  0x86   :  { %v44_v16 = vpack.c.bf16 %v188_v15, %v188_v15 }
  0x87   :  { %v162_v34 = vpop.permute.xlu0 %161 }
  0x88   :  { %192 = vmatmul.mubr.msk.bf16.vlgmr.msra.gmra.mrb[0].mxu1 %vm52_vm2, %v44_v16  ;;  %196 = vmatmul.mubr.msk.bf16.vlgmr.msra.gmra.mrb[0].mxu0 %vm52_vm2, %v44_v16 }
 0x15b   :  { %v97_v22 = vpop.f32.mrb[0].mxu1  ;;  %v149_v23 = vpop.f32.mrb[0].mxu0 }
 0x15c   :  { %v150_v25 = vadd.f32 %v149_v23, %v97_v22  ;;  %v99_v26 = vpop.f32.mrb[1].mxu1  ;;  %v151_v27 = vpop.f32.mrb[1].mxu0 }
 0x15d   :  { %v152_v28 = vadd.f32 %v151_v27, %v99_v26  ;;  %v101_v29 = vpop.f32.mrb[2].mxu1  ;;  %v153_v30 = vpop.f32.mrb[2].mxu0 }
 0x15e   :  { %v157_v31 = vsub.f32 %v150_v25, %v33_v21  ;;  %v102_v32 = vpop.f32.mrb[3].mxu1  ;;  %v154_v33 = vpop.f32.mrb[3].mxu0 }
 0x15f   :  { %v158_v35 = vsub.f32 %v152_v28, %v34_v24 }
 0x160   :  { %v164_v36 = vmul.f32 %v162_v34, %v157_v31 }
 0x161   :  { %v165_v37 = vmul.f32 %v162_v34, %v158_v35 }
 0x162   :  { %v166_v38 = vadd.f32 %v164_v36, %v33_v21 }
 0x163   :  { %v167_v39 = vadd.f32 %v165_v37, %v34_v24 }
 0x164   :  { %168 = vst [vmem:[#allocation2] sm:$0xff] %v166_v38 }
 0x165   :  { %169 = vst [vmem:[#allocation2 + $0x8] sm:$0xff] %v167_v39 }
 0x166   :  { %218 = shalt.err (!%p215_p4)
}
 0x167   :  { %s219_s24 = scalar_lea.hbm %s287_s4, 256 }
 0x168   :  { %p220_p5 = scmp.ne.s32.totalorder %s287_s4, %s219_s24  ;;  %p223_p6 = scmp.lt.u32.totalorder %s219_s24, %s287_s4 }
 0x16a   :  { %p225_p7 = pnand %p223_p6, %p220_p5 }
 0x16c   :  { %228 = shalt.err (!%p225_p7)
}
 0x16d   :  { %179 = dma.vmem_to_hbm [thread:$0]  %s177_s1, 256, %s287_s4, [#allocation3]  }
 0x16e   :  { %229 = dma.done.wait [#allocation3], 256  }
 0x16f   :  { %230 = vsyncadd [#allocation3], 4294967040 }
 0x170   :  { %183 = vsyncpa [#allocation3], 1 }

</bundles_post_ra>
